<compile_context>
chip_gen: v7x
topology: tpu7x:2x2x1
jax: 0.10.0
libtpu: 0.0.40
codegen_flags: <defaults>
</compile_context>

<pallas_src>
import jax
import jax.numpy as jnp
from jax.experimental import pallas as pl
from jax.experimental.pallas import tpu as pltpu


def _sum_layer_kernel(x_ref, w_ref, o_ref):
    # x_ref: (tb, C)    log-domain child values, lane-dense
    # w_ref: (C, num)   block-diagonal normalized weights (VMEM-resident)
    # o_ref: (tb, num)  logsumexp output
    x = x_ref[...]
    m = jnp.max(x, axis=-1, keepdims=True)             # (tb, 1)   XLU full-lane reduce
    p = jnp.exp(x - m)                                  # (tb, C)   EUP
    s = jnp.dot(p, w_ref[...],
                preferred_element_type=jnp.float32)     # (tb, num) MXU segmented w-sum
    o_ref[...] = (m + jnp.log(s)).astype(o_ref.dtype)


def _block_diag_weights(logparams, num, cpn, normalize, dtype):
    """Build (child_num, num) block-diagonal matrix of normalized weights.

    W[g*cpn + j, h] = params[g, j] if g == h else 0, so that
    (exp(x - m) @ W)[:, g] = sum_j params[g, j] * exp(x[:, g*cpn + j] - m).
    """
    params = jnp.exp(logparams).reshape(num, cpn)
    if normalize:
        params = params / jnp.sum(params, axis=-1, keepdims=True)
    eye = jnp.eye(num, dtype=params.dtype)
    w = (params[:, :, None] * eye[:, None, :]).reshape(num * cpn, num)
    return w.astype(dtype)


def sum_layer_forward(x, logparams, num, normalize=True):
    """Pallas implementation of SumLayer.forward.

    x:         (batch, child_num) float32  (log-domain child outputs)
    logparams: (child_num,) float32        (unnormalized log weights)
    returns:   (batch, num) float32
    """
    batch, child_num = x.shape
    assert child_num % num == 0
    cpn = child_num // num

    # Parameter glue (matches get_params; forward uses log(params) directly,
    # folded here into the block-diagonal matmul weights).
    w = _block_diag_weights(logparams, num, cpn, normalize, x.dtype)

    # Batch tiling: whole batch as one block when small (full-dim block is
    # always layout-legal); 1024-row tiles otherwise for pipelining/megacore.
    tb = batch if batch <= 1024 else 1024
    grid = (pl.cdiv(batch, tb),)

    return pl.pallas_call(
        _sum_layer_kernel,
        out_shape=jax.ShapeDtypeStruct((batch, num), x.dtype),
        grid=grid,
        in_specs=[
            pl.BlockSpec((tb, child_num), lambda i: (i, 0)),
            pl.BlockSpec((child_num, num), lambda i: (0, 0)),  # VMEM-resident weights
        ],
        out_specs=pl.BlockSpec((tb, num), lambda i: (i, 0)),
        compiler_params=pltpu.CompilerParams(
            dimension_semantics=("parallel",),
            vmem_limit_bytes=32 * 1024 * 1024,
        ),
    )(x, w)


def sum_layer_reference(x, logparams, num, normalize=True):
    batch, child_num = x.shape
    cpn = child_num // num
    params = jnp.exp(logparams).reshape(num, cpn)
    if normalize:
        params = params / jnp.sum(params, axis=-1, keepdims=True)
    lp = jnp.log(params)
    z = x.reshape(batch, num, cpn) + lp[None, :, :]
    return jax.scipy.special.logsumexp(z, axis=-1)


if __name__ == "__main__":
    # SumLayer(num=16, child_num=128) -> child_per_node = 8
    batch = 8
    num = 16
    child_num = 128
    cpn = child_num // num

    key = jax.random.PRNGKey(0)
    k_x, k_p = jax.random.split(key)

    # Deterministic init mirroring:
    #   logparams = log(uniform([child_num]) / child_per_node)
    u = jax.random.uniform(k_p, (child_num,), dtype=jnp.float32,
                           minval=1e-3, maxval=1.0)
    logparams = jnp.log(u / cpn)

    # Log-domain child values (e.g. log-probabilities from a lower layer).
    x = jax.random.normal(k_x, (batch, child_num), dtype=jnp.float32) - 2.0

    out = sum_layer_forward(x, logparams, num)
    out = jax.block_until_ready(out)

    ref = sum_layer_reference(x, logparams, num)
    assert out.shape == (batch, num)
    assert jnp.allclose(out, ref, atol=1e-5, rtol=1e-5), (
        f"max err {jnp.max(jnp.abs(out - ref))}")

    print("KERNEL_OK")
</pallas_src>

<mosaic_0001>
module attributes {stable_mosaic.version = 11 : i64} {
  func.func @_sum_layer_kernel(%arg0: i32, %arg1: memref<8x128xf32, #tpu.memory_space<vmem>>, %arg2: memref<128x16xf32, #tpu.memory_space<vmem>>, %arg3: memref<8x16xf32, #tpu.memory_space<vmem>>) attributes {dimension_semantics = [#tpu.dimension_semantics<parallel>], iteration_bounds = array<i64: 1>, scalar_prefetch = 0 : i64, scratch_operands = 0 : i64, tpu.core_type = #tpu.core_type<tc>, window_params = [{transform_indices = @transform_0, window_bounds = array<i64: 8, 128>}, {pipeline_mode = #tpu.pipeline_mode<synchronous>, transform_indices = @transform_1, window_bounds = array<i64: 128, 16>}, {transform_indices = @transform_2, window_bounds = array<i64: 8, 16>}]} {
    %c0 = arith.constant 0 : index
    %c0_0 = arith.constant 0 : index
    %0 = vector.load %arg1[%c0, %c0_0] : memref<8x128xf32, #tpu.memory_space<vmem>>, vector<8x128xf32>
    %cst = arith.constant dense<0xFF800000> : vector<8xf32>
    %1 = vector.multi_reduction <maximumf>, %0, %cst [1] : vector<8x128xf32> to vector<8xf32>
    %2 = vector.shape_cast %1 : vector<8xf32> to vector<8x1xf32>
    %3 = vector.broadcast %2 : vector<8x1xf32> to vector<8x128xf32>
    %4 = arith.subf %0, %3 : vector<8x128xf32>
    %5 = math.exp %4 : vector<8x128xf32>
    %c0_1 = arith.constant 0 : index
    %c0_2 = arith.constant 0 : index
    %6 = vector.load %arg2[%c0_1, %c0_2] : memref<128x16xf32, #tpu.memory_space<vmem>>, vector<128x16xf32>
    %cst_3 = arith.constant dense<0.000000e+00> : vector<8x16xf32>
    %7 = tpu.matmul %5, %6, %cst_3 {dimension_numbers = #tpu.dot_dimension_numbers<[1], [0], [0], [1], [0, 0, 1, 1], [], []>} : vector<8x128xf32>, vector<128x16xf32>, vector<8x16xf32> -> vector<8x16xf32>
    %8 = math.log %7 : vector<8x16xf32>
    %9 = vector.broadcast %2 : vector<8x1xf32> to vector<8x16xf32>
    %10 = arith.addf %9, %8 : vector<8x16xf32>
    %c0_4 = arith.constant 0 : index
    %c0_5 = arith.constant 0 : index
    %11 = vector.load %arg3[%c0_4, %c0_5] : memref<8x16xf32, #tpu.memory_space<vmem>>, vector<8x16xf32>
    tpu.vector_store %arg3[%c0_4, %c0_5], %10 {strides = array<i32>} : memref<8x16xf32, #tpu.memory_space<vmem>>, vector<8x16xf32>,
    return
  }
  func.func @transform_0(%arg0: i32) -> (i32, i32) {
    %c0_i32 = arith.constant 0 : i32
    %c0_i32_0 = arith.constant 0 : i32
    return %arg0, %c0_i32 : i32, i32
  }
  func.func @transform_1(%arg0: i32) -> (i32, i32) {
    %c0_i32 = arith.constant 0 : i32
    %c0_i32_0 = arith.constant 0 : i32
    %c0_i32_1 = arith.constant 0 : i32
    return %c0_i32, %c0_i32_0 : i32, i32
  }
  func.func @transform_2(%arg0: i32) -> (i32, i32) {
    %c0_i32 = arith.constant 0 : i32
    %c0_i32_0 = arith.constant 0 : i32
    return %arg0, %c0_i32 : i32, i32
  }
}

</mosaic_0001>

<bundles_post_ra>
// kernel: tpu_custom_call.1
= control target key start
LH: loop header
LB: loop body
LE: loop exit
PB: predicated region body
PF: predicated region fallthrough
CT: control target
= control target key end

     0   :  { %v231_v3 = vmov 0.0|0.0   ;;  %s313_s0 = inlined_call_operand.vmem [shape: f32[8,128], index: 0, kind: input, shape index: {}]   ;;  %s314_s1 = inlined_call_operand.vmem [shape: f32[128,16], index: 1, kind: input, shape index: {}]   ;;  %s315_s2 = inlined_call_operand.hbm [shape: f32[8,16], index: 2, kind: output, shape index: {}]  }
   0x1   :  { %v12_v0 = vld [vmem:[%s313_s0] sm:$0xff]  ;;  %v19_v2 = vld [vmem:[%s314_s1 + $0x8] sm:$0xff]  ;;  %175 = vmatprep.subr.bf16.mxu0 %v231_v3  ;;  %v20_v5 = vld [vmem:[%s314_s1 + $0x10] sm:$0xff] }
   0x2   :  { %v18_v1 = vld [vmem:[%s314_s1] sm:$0xff]  ;;  %13 = vmax.xlane.f32.xlu0 %v12_v0  ;;  %v21_v6 = vld [vmem:[%s314_s1 + $0x18] sm:$0xff] }
   0x3   :  { %v176_v4 = vpack.c.bf16 %v19_v2, %v18_v1  ;;  %v179_v7 = vpack.c.bf16 %v21_v6, %v20_v5 }
   0x5   :  { %177 = vmatpush3.bf16.msra.mxu0 %v176_v4 }
   0x6   :  { %7 = vsyncpa [#allocation3], 0  ;;  %178 = vmatprep.subr.bf16.mxu0 %v231_v3  ;;  %v22_v8 = vld [vmem:[%s314_s1 + $0x20] sm:$0xff]  ;;  %v23_v9 = vld [vmem:[%s314_s1 + $0x28] sm:$0xff]  ;;  %vm232_vm0 = vmmov 0   ;;  %v233_v22 = vmov 0.0  }
   0x7   :  { %v182_v10 = vpack.c.bf16 %v23_v9, %v22_v8  ;;  %v24_v11 = vld [vmem:[%s314_s1 + $0x30] sm:$0xff]  ;;  %v25_v12 = vld [vmem:[%s314_s1 + $0x38] sm:$0xff]  ;;  %v26_v14 = vld [vmem:[%s314_s1 + $0x40] sm:$0xff]  ;;  %172 = vmatprep.mubr.msk.f32.mxu0 %vm232_vm0, %v233_v22  ;;  %s234_s14 = smov [#allocation2]   ;;  %vm107_vm1 = vcmask 130048  }
   0x8   :  { %v185_v13 = vpack.c.bf16 %v25_v12, %v24_v11  ;;  %v27_v15 = vld [vmem:[%s314_s1 + $0x48] sm:$0xff]  ;;  %v28_v17 = vld [vmem:[%s314_s1 + $0x50] sm:$0xff]  ;;  %v29_v18 = vld [vmem:[%s314_s1 + $0x58] sm:$0xff]  ;;  %s115_s15 = sshll.u32 %s234_s14, 4  ;;  %s116_s15 = int_to_ptr.vmem [resolvable:$true] %s115_s15 }
   0x9   :  { %180 = vmatpush3.bf16.msra.mxu0 %v179_v7  ;;  %v188_v16 = vpack.c.bf16 %v27_v15, %v26_v14  ;;  %v191_v19 = vpack.c.bf16 %v29_v18, %v28_v17  ;;  %v30_v20 = vld [vmem:[%s314_s1 + $0x60] sm:$0xff]  ;;  %v31_v21 = vld [vmem:[%s314_s1 + $0x68] sm:$0xff]  ;;  %v32_v24 = vld [vmem:[%s314_s1 + $0x70] sm:$0xff]  ;;  %p212_p1 = scmp.lt.s32.totalorder %s116_s15, %s116_s15 }
   0xa   :  { %181 = vmatprep.subr.bf16.mxu0 %v231_v3  ;;  %v194_v23 = vpack.c.bf16 %v31_v21, %v30_v20  ;;  %v33_v25 = vld [vmem:[%s314_s1 + $0x78] sm:$0xff]  ;;  %s207_s1 = scalar_lea.vmem %s116_s15, 128 }
   0xb   :  { %v197_v26 = vpack.c.bf16 %v33_v25, %v32_v24  ;;  %p208_p0 = scmp.ne.s32.totalorder %s116_s15, %s207_s1  ;;  %p213_p2 = scmp.lt.s32.totalorder %s207_s1, %s207_s1 }
   0xd   :  { %183 = vmatpush3.bf16.msra.mxu0 %v182_v10  ;;  %p214_p3 = por %p213_p2, %p212_p1 }
   0xe   :  { %184 = vmatprep.subr.bf16.mxu0 %v231_v3 }
   0xf   :  { %p215_p4 = pnand %p214_p3, %p208_p0 }
  0x11   :  { %186 = vmatpush3.bf16.msra.mxu0 %v185_v13 }
  0x12   :  { %187 = vmatprep.subr.bf16.mxu0 %v231_v3 }
  0x15   :  { %189 = vmatpush3.bf16.msra.mxu0 %v188_v16 }
  0x16   :  { %190 = vmatprep.subr.bf16.mxu0 %v231_v3 }
  0x19   :  { %192 = vmatpush3.bf16.msra.mxu0 %v191_v19 }
  0x1a   :  { %193 = vmatprep.subr.bf16.mxu0 %v231_v3 }
  0x1d   :  { %195 = vmatpush3.bf16.msra.mxu0 %v194_v23 }
  0x1e   :  { %196 = vmatprep.subr.bf16.mxu0 %v231_v3 }
  0x21   :  { %198 = vmatpush3.bf16.msra.mxu0 %v197_v26 }
  0x8f   :  { %v14_v27 = vpop.xlane.xlu0 %13 }
  0x90   :  { %v15_v28 = vsub.f32 %v12_v0, %v14_v27 }
  0x92   :  { %v16_v29 = vmul.f32 1.442695, %v15_v28 }
  0x94   :  { %203 = vpow2.f32 %v16_v29 }
  0x9e   :  { %v204_v30 = vpop.eup %203 }
  0x9f   :  { %173 = vmatmul.mubr.f32.vlgmr.msra.gmra.mrb[0].mxu0 %v204_v30 }
 0x172   :  { %v100_v31 = vpop.f32.mrb[0].mxu0 }
 0x173   :  { %205 = vlog2.f32 %v100_v31  ;;  %v174_v32 = vpop.f32.mrb[1].mxu0 }
 0x17d   :  { %v206_v33 = vpop.eup %205 }
 0x17e   :  { %v105_v34 = vmul.f32 0.6931472, %v206_v33 }
 0x180   :  { %v106_v35 = vadd.f32 %v105_v34, %v14_v27 }
 0x182   :  { %108 = vst.msk [vmem:[#allocation2] sm:$0xff] %vm107_vm1, %v106_v35 }
 0x183   :  { %218 = shalt.err (!%p215_p4)
}
 0x184   :  { %s219_s18 = scalar_lea.hbm %s315_s2, 128 }
 0x185   :  { %p220_p5 = scmp.ne.s32.totalorder %s315_s2, %s219_s18  ;;  %p223_p6 = scmp.lt.u32.totalorder %s219_s18, %s315_s2 }
 0x187   :  { %p225_p7 = pnand %p223_p6, %p220_p5 }
 0x189   :  { %228 = shalt.err (!%p225_p7)
}
 0x18a   :  { %118 = dma.vmem_to_hbm [thread:$0]  %s116_s15, 128, %s315_s2, [#allocation3]  }
 0x18b   :  { %229 = dma.done.wait [#allocation3], 128  }
 0x18c   :  { %230 = vsyncadd [#allocation3], 4294967168 }
 0x18d   :  { %122 = vsyncpa [#allocation3], 1 }

</bundles_post_ra>
